<compile_context>
chip_gen: v7x
topology: tpu7x:2x2x1
jax: 0.10.0
libtpu: 0.0.40
codegen_flags: <defaults>
</compile_context>

<pallas_src>
import numpy as np
import jax
import jax.numpy as jnp
from jax.experimental import pallas as pl
from jax.experimental.pallas import tpu as pltpu

LANES = 128      # vreg / MXU lane width
SUBLANES = 8     # vreg sublane count (f32)


def _round_up(v, m):
    return ((v + m - 1) // m) * m


def fnn_kernel(xT_ref, w1t_ref, w2t_ref, w3t_ref, w4t_ref,
               b1_ref, b2_ref, b3_ref, b4_ref, o_ref):
    """Fused 4-layer MLP, feature-major.

    xT_ref : (d_pad, tb)   input tile, batch along lanes
    wLt    : s * W_L^T     (out, in), zero-padded to sublane multiples
    bL     : s * b_L       as a column (out, 1), broadcast along lanes
    o_ref  : (o_pad, tb)   y^T tile (rows >= d_out are exactly zero)
    """
    xT = xT_ref[...]
    h1 = jnp.tanh(jnp.dot(w1t_ref[...], xT,
                          preferred_element_type=jnp.float32) + b1_ref[...])
    h2 = jnp.tanh(jnp.dot(w2t_ref[...], h1,
                          preferred_element_type=jnp.float32) + b2_ref[...])
    h3 = jnp.tanh(jnp.dot(w3t_ref[...], h2,
                          preferred_element_type=jnp.float32) + b3_ref[...])
    y = jnp.dot(w4t_ref[...], h3,
                preferred_element_type=jnp.float32) + b4_ref[...]
    o_ref[...] = y.astype(o_ref.dtype)


def pack_params(params, scale):
    """One-time transform: fold the scale into all weights/biases, transpose to
    feature-major (out, in), and zero-pad each array to sublane multiples.
    Every array keeps its exact (small) shape -> full-array BlockSpecs, no
    in-kernel slicing."""
    w1, b1, w2, b2, w3, b3, w4, b4 = [jnp.asarray(p, jnp.float32) for p in params]
    d_in, h = w1.shape
    d_out = w4.shape[1]
    d_pad = _round_up(d_in, SUBLANES)
    o_pad = _round_up(d_out, SUBLANES)
    s = jnp.float32(scale)

    w1t = jnp.zeros((h, d_pad), jnp.float32).at[:, :d_in].set(s * w1.T)
    w2t = s * w2.T
    w3t = s * w3.T
    w4t = jnp.zeros((o_pad, h), jnp.float32).at[:d_out, :].set(s * w4.T)
    b1c = (s * b1).reshape(h, 1)
    b2c = (s * b2).reshape(h, 1)
    b3c = (s * b3).reshape(h, 1)
    b4c = jnp.zeros((o_pad, 1), jnp.float32).at[:d_out, 0].set(s * b4.reshape(-1))
    return (w1t, w2t, w3t, w4t, b1c, b2c, b3c, b4c)


def fnn_forward(x, packed, d_out, *, batch_tile=1024):
    w1t, w2t, w3t, w4t, b1c, b2c, b3c, b4c = packed
    x = jnp.asarray(x, jnp.float32)
    B, d_in = x.shape
    h, d_pad = w1t.shape
    o_pad = w4t.shape[0]
    assert d_in <= d_pad and w4t.shape[1] == h and d_out <= o_pad

    # Batch lives on the lane axis -> tile must be a multiple of 128.
    lane_pad = _round_up(B, LANES)
    tb = min(batch_tile, lane_pad)
    # Grid-aware tile: keep >=2 grid steps when the padded batch allows it so
    # dimension_semantics=("parallel",) can shard across v7x's two TensorCores.
    if lane_pad >= 2 * LANES and tb >= lane_pad:
        tb = _round_up(lane_pad // 2, LANES)
    b_pad = _round_up(lane_pad, tb)

    # Feature-major, zero-padded input (d_pad, b_pad); padded rows/lanes are 0
    # and the matching weight columns are 0, so results are exact.
    xT = jnp.zeros((d_pad, b_pad), jnp.float32).at[:d_in, :B].set(x.T)

    const = lambda i: (0, 0)     # parameters: VMEM-resident across the grid

    flops = 2 * B * (d_in * h + 2 * h * h + h * d_out)
    transcendentals = 3 * B * h
    bytes_accessed = 4 * (d_pad * b_pad + o_pad * b_pad
                          + sum(int(np.prod(p.shape)) for p in packed))

    outT = pl.pallas_call(
        fnn_kernel,
        out_shape=jax.ShapeDtypeStruct((o_pad, b_pad), jnp.float32),
        grid=(b_pad // tb,),
        in_specs=[
            pl.BlockSpec((d_pad, tb), lambda i: (0, i)),   # x^T tile, pipelined
            pl.BlockSpec(w1t.shape, const),
            pl.BlockSpec(w2t.shape, const),
            pl.BlockSpec(w3t.shape, const),
            pl.BlockSpec(w4t.shape, const),
            pl.BlockSpec(b1c.shape, const),
            pl.BlockSpec(b2c.shape, const),
            pl.BlockSpec(b3c.shape, const),
            pl.BlockSpec(b4c.shape, const),
        ],
        out_specs=pl.BlockSpec((o_pad, tb), lambda i: (0, i)),  # lane-dense y^T
        compiler_params=pltpu.CompilerParams(
            dimension_semantics=("parallel",)),                 # megacore / 2 TCs
        cost_estimate=pl.CostEstimate(flops=flops,
                                      transcendentals=transcendentals,
                                      bytes_accessed=bytes_accessed),
    )(xT, w1t, w2t, w3t, w4t, b1c, b2c, b3c, b4c)

    return outT[:d_out, :B].T


def fnn_reference(x, params, s):
    """Pure-JAX reference with the original (unfolded) PyTorch math."""
    w1, b1, w2, b2, w3, b3, w4, b4 = params
    y1 = jnp.tanh(s * (x @ w1 + b1))
    y2 = jnp.tanh(s * (y1 @ w2 + b2))
    y3 = jnp.tanh(s * (y2 @ w3 + b3))
    return s * (y3 @ w4 + b4)


def init_params(key, D_in, H, D_out):
    # Mirrors the torch.nn.init.normal_ calls (std = sqrt(2/(fan_in+fan_out)) for
    # weights, std = 1 for biases). Weights stored pre-transposed as (in, out).
    ks = jax.random.split(key, 8)

    def nrm(k, shape, std):
        return (std * jax.random.normal(k, shape)).astype(jnp.float32)

    w1 = nrm(ks[0], (D_in, H), np.sqrt(2.0 / (D_in + H)))
    w2 = nrm(ks[1], (H, H),    np.sqrt(2.0 / (H + H)))
    w3 = nrm(ks[2], (H, H),    np.sqrt(2.0 / (H + H)))
    w4 = nrm(ks[3], (H, D_out), np.sqrt(2.0 / (H + D_out)))
    b1 = nrm(ks[4], (1, H), 1.0)
    b2 = nrm(ks[5], (1, H), 1.0)
    b3 = nrm(ks[6], (1, H), 1.0)
    b4 = nrm(ks[7], (1, D_out), 1.0)
    return (w1, b1, w2, b2, w3, b3, w4, b4)


if __name__ == "__main__":
    D_in, H, D_out = 4, 32, 2
    B = 8

    key = jax.random.PRNGKey(0)
    kx, kp, kx2 = jax.random.split(key, 3)
    x = jax.random.normal(kx, (B, D_in), dtype=jnp.float32)
    params = init_params(kp, D_in, H, D_out)

    # a1 = 0.1 parameter; n = 1/a1 frozen at init, so the effective scale is n*a1.
    a1 = jnp.float32(0.1)
    n = jnp.float32(1.0) / a1
    s = n * a1

    packed = pack_params(params, s)    # one-time: scale folded, exact-shape operands

    out = jax.block_until_ready(fnn_forward(x, packed, D_out))
    ref = fnn_reference(x, params, s)
    np.testing.assert_allclose(np.asarray(out), np.asarray(ref), rtol=1e-5, atol=1e-5)

    # Odd batch -> exercises lane padding, the final slice, and a 2-step grid.
    x2 = jax.random.normal(kx2, (300, D_in), dtype=jnp.float32)
    out2 = jax.block_until_ready(fnn_forward(x2, packed, D_out))
    ref2 = fnn_reference(x2, params, s)
    np.testing.assert_allclose(np.asarray(out2), np.asarray(ref2), rtol=1e-5, atol=1e-5)

    print("KERNEL_OK")
</pallas_src>

<mosaic_0001>
module attributes {stable_mosaic.version = 11 : i64} {
  func.func @fnn_kernel(%arg0: i32, %arg1: memref<8x128xf32, #tpu.memory_space<vmem>>, %arg2: memref<32x8xf32, #tpu.memory_space<vmem>>, %arg3: memref<32x32xf32, #tpu.memory_space<vmem>>, %arg4: memref<32x32xf32, #tpu.memory_space<vmem>>, %arg5: memref<8x32xf32, #tpu.memory_space<vmem>>, %arg6: memref<32x1xf32, #tpu.memory_space<vmem>>, %arg7: memref<32x1xf32, #tpu.memory_space<vmem>>, %arg8: memref<32x1xf32, #tpu.memory_space<vmem>>, %arg9: memref<8x1xf32, #tpu.memory_space<vmem>>, %arg10: memref<8x128xf32, #tpu.memory_space<vmem>>) attributes {dimension_semantics = [#tpu.dimension_semantics<parallel>], iteration_bounds = array<i64: 1>, scalar_prefetch = 0 : i64, scratch_operands = 0 : i64, tpu.core_type = #tpu.core_type<tc>, window_params = [{transform_indices = @transform_0, window_bounds = array<i64: 8, 128>}, {pipeline_mode = #tpu.pipeline_mode<synchronous>, transform_indices = @transform_1, window_bounds = array<i64: 32, 8>}, {pipeline_mode = #tpu.pipeline_mode<synchronous>, transform_indices = @transform_2, window_bounds = array<i64: 32, 32>}, {pipeline_mode = #tpu.pipeline_mode<synchronous>, transform_indices = @transform_3, window_bounds = array<i64: 32, 32>}, {pipeline_mode = #tpu.pipeline_mode<synchronous>, transform_indices = @transform_4, window_bounds = array<i64: 8, 32>}, {pipeline_mode = #tpu.pipeline_mode<synchronous>, transform_indices = @transform_5, window_bounds = array<i64: 32, 1>}, {pipeline_mode = #tpu.pipeline_mode<synchronous>, transform_indices = @transform_6, window_bounds = array<i64: 32, 1>}, {pipeline_mode = #tpu.pipeline_mode<synchronous>, transform_indices = @transform_7, window_bounds = array<i64: 32, 1>}, {pipeline_mode = #tpu.pipeline_mode<synchronous>, transform_indices = @transform_8, window_bounds = array<i64: 8, 1>}, {transform_indices = @transform_9, window_bounds = array<i64: 8, 128>}]} {
    %c0 = arith.constant 0 : index
    %c0_0 = arith.constant 0 : index
    %0 = vector.load %arg1[%c0, %c0_0] : memref<8x128xf32, #tpu.memory_space<vmem>>, vector<8x128xf32>
    %c0_1 = arith.constant 0 : index
    %c0_2 = arith.constant 0 : index
    %1 = vector.load %arg2[%c0_1, %c0_2] : memref<32x8xf32, #tpu.memory_space<vmem>>, vector<32x8xf32>
    %cst = arith.constant dense<0.000000e+00> : vector<32x128xf32>
    %2 = tpu.matmul %1, %0, %cst {dimension_numbers = #tpu.dot_dimension_numbers<[1], [0], [0], [1], [0, 0, 1, 1], [], []>} : vector<32x8xf32>, vector<8x128xf32>, vector<32x128xf32> -> vector<32x128xf32>
    %c0_3 = arith.constant 0 : index
    %c0_4 = arith.constant 0 : index
    %3 = vector.load %arg6[%c0_3, %c0_4] : memref<32x1xf32, #tpu.memory_space<vmem>>, vector<32x1xf32>
    %4 = vector.broadcast %3 : vector<32x1xf32> to vector<32x128xf32>
    %5 = arith.addf %2, %4 : vector<32x128xf32>
    %6 = math.tanh %5 : vector<32x128xf32>
    %c0_5 = arith.constant 0 : index
    %c0_6 = arith.constant 0 : index
    %7 = vector.load %arg3[%c0_5, %c0_6] : memref<32x32xf32, #tpu.memory_space<vmem>>, vector<32x32xf32>
    %cst_7 = arith.constant dense<0.000000e+00> : vector<32x128xf32>
    %8 = tpu.matmul %7, %6, %cst_7 {dimension_numbers = #tpu.dot_dimension_numbers<[1], [0], [0], [1], [0, 0, 1, 1], [], []>} : vector<32x32xf32>, vector<32x128xf32>, vector<32x128xf32> -> vector<32x128xf32>
    %c0_8 = arith.constant 0 : index
    %c0_9 = arith.constant 0 : index
    %9 = vector.load %arg7[%c0_8, %c0_9] : memref<32x1xf32, #tpu.memory_space<vmem>>, vector<32x1xf32>
    %10 = vector.broadcast %9 : vector<32x1xf32> to vector<32x128xf32>
    %11 = arith.addf %8, %10 : vector<32x128xf32>
    %12 = math.tanh %11 : vector<32x128xf32>
    %c0_10 = arith.constant 0 : index
    %c0_11 = arith.constant 0 : index
    %13 = vector.load %arg4[%c0_10, %c0_11] : memref<32x32xf32, #tpu.memory_space<vmem>>, vector<32x32xf32>
    %cst_12 = arith.constant dense<0.000000e+00> : vector<32x128xf32>
    %14 = tpu.matmul %13, %12, %cst_12 {dimension_numbers = #tpu.dot_dimension_numbers<[1], [0], [0], [1], [0, 0, 1, 1], [], []>} : vector<32x32xf32>, vector<32x128xf32>, vector<32x128xf32> -> vector<32x128xf32>
    %c0_13 = arith.constant 0 : index
    %c0_14 = arith.constant 0 : index
    %15 = vector.load %arg8[%c0_13, %c0_14] : memref<32x1xf32, #tpu.memory_space<vmem>>, vector<32x1xf32>
    %16 = vector.broadcast %15 : vector<32x1xf32> to vector<32x128xf32>
    %17 = arith.addf %14, %16 : vector<32x128xf32>
    %18 = math.tanh %17 : vector<32x128xf32>
    %c0_15 = arith.constant 0 : index
    %c0_16 = arith.constant 0 : index
    %19 = vector.load %arg5[%c0_15, %c0_16] : memref<8x32xf32, #tpu.memory_space<vmem>>, vector<8x32xf32>
    %cst_17 = arith.constant dense<0.000000e+00> : vector<8x128xf32>
    %20 = tpu.matmul %19, %18, %cst_17 {dimension_numbers = #tpu.dot_dimension_numbers<[1], [0], [0], [1], [0, 0, 1, 1], [], []>} : vector<8x32xf32>, vector<32x128xf32>, vector<8x128xf32> -> vector<8x128xf32>
    %c0_18 = arith.constant 0 : index
    %c0_19 = arith.constant 0 : index
    %21 = vector.load %arg9[%c0_18, %c0_19] : memref<8x1xf32, #tpu.memory_space<vmem>>, vector<8x1xf32>
    %22 = vector.broadcast %21 : vector<8x1xf32> to vector<8x128xf32>
    %23 = arith.addf %20, %22 : vector<8x128xf32>
    %c0_20 = arith.constant 0 : index
    %c0_21 = arith.constant 0 : index
    %24 = vector.load %arg10[%c0_20, %c0_21] : memref<8x128xf32, #tpu.memory_space<vmem>>, vector<8x128xf32>
    tpu.vector_store %arg10[%c0_20, %c0_21], %23 {strides = array<i32>} : memref<8x128xf32, #tpu.memory_space<vmem>>, vector<8x128xf32>,
    return
  }
  func.func @transform_0(%arg0: i32) -> (i32, i32) {
    %c0_i32 = arith.constant 0 : i32
    %c0_i32_0 = arith.constant 0 : i32
    return %c0_i32, %arg0 : i32, i32
  }
  func.func @transform_1(%arg0: i32) -> (i32, i32) {
    %c0_i32 = arith.constant 0 : i32
    %c0_i32_0 = arith.constant 0 : i32
    %c0_i32_1 = arith.constant 0 : i32
    return %c0_i32, %c0_i32_0 : i32, i32
  }
  func.func @transform_2(%arg0: i32) -> (i32, i32) {
    %c0_i32 = arith.constant 0 : i32
    %c0_i32_0 = arith.constant 0 : i32
    %c0_i32_1 = arith.constant 0 : i32
    return %c0_i32, %c0_i32_0 : i32, i32
  }
  func.func @transform_3(%arg0: i32) -> (i32, i32) {
    %c0_i32 = arith.constant 0 : i32
    %c0_i32_0 = arith.constant 0 : i32
    %c0_i32_1 = arith.constant 0 : i32
    return %c0_i32, %c0_i32_0 : i32, i32
  }
  func.func @transform_4(%arg0: i32) -> (i32, i32) {
    %c0_i32 = arith.constant 0 : i32
    %c0_i32_0 = arith.constant 0 : i32
    %c0_i32_1 = arith.constant 0 : i32
    return %c0_i32, %c0_i32_0 : i32, i32
  }
  func.func @transform_5(%arg0: i32) -> (i32, i32) {
    %c0_i32 = arith.constant 0 : i32
    %c0_i32_0 = arith.constant 0 : i32
    %c0_i32_1 = arith.constant 0 : i32
    return %c0_i32, %c0_i32_0 : i32, i32
  }
  func.func @transform_6(%arg0: i32) -> (i32, i32) {
    %c0_i32 = arith.constant 0 : i32
    %c0_i32_0 = arith.constant 0 : i32
    %c0_i32_1 = arith.constant 0 : i32
    return %c0_i32, %c0_i32_0 : i32, i32
  }
  func.func @transform_7(%arg0: i32) -> (i32, i32) {
    %c0_i32 = arith.constant 0 : i32
    %c0_i32_0 = arith.constant 0 : i32
    %c0_i32_1 = arith.constant 0 : i32
    return %c0_i32, %c0_i32_0 : i32, i32
  }
  func.func @transform_8(%arg0: i32) -> (i32, i32) {
    %c0_i32 = arith.constant 0 : i32
    %c0_i32_0 = arith.constant 0 : i32
    %c0_i32_1 = arith.constant 0 : i32
    return %c0_i32, %c0_i32_0 : i32, i32
  }
  func.func @transform_9(%arg0: i32) -> (i32, i32) {
    %c0_i32 = arith.constant 0 : i32
    %c0_i32_0 = arith.constant 0 : i32
    return %c0_i32, %arg0 : i32, i32
  }
}

</mosaic_0001>

<bundles_post_ra>
// kernel: tpu_custom_call.1
= control target key start
LH: loop header
LB: loop body
LE: loop exit
PB: predicated region body
PF: predicated region fallthrough
CT: control target
= control target key end

     0   :  { %vm62_vm0 = vcmask 64512   ;;  %v681_v5 = vmov 0   ;;  %s842_s0 = inlined_call_operand.vmem [shape: f32[8,128], index: 0, kind: input, shape index: {}]   ;;  %s843_s1 = inlined_call_operand.vmem [shape: f32[32,8], index: 1, kind: input, shape index: {}]   ;;  %s844_s2 = inlined_call_operand.vmem [shape: f32[32,32], index: 2, kind: input, shape index: {}]   ;;  %s845_s3 = inlined_call_operand.vmem [shape: f32[32,32], index: 3, kind: input, shape index: {}]   ;;  %s846_s4 = inlined_call_operand.vmem [shape: f32[8,32], index: 4, kind: input, shape index: {}]   ;;  %s847_s5 = inlined_call_operand.vmem [shape: f32[32,1], index: 5, kind: input, shape index: {}]   ;;  %s848_s6 = inlined_call_operand.vmem [shape: f32[32,1], index: 6, kind: input, shape index: {}]   ;;  %s849_s7 = inlined_call_operand.vmem [shape: f32[32,1], index: 7, kind: input, shape index: {}]   ;;  %s850_s8 = inlined_call_operand.vmem [shape: f32[8,1], index: 8, kind: input, shape index: {}]   ;;  %s851_s9 = inlined_call_operand.hbm [shape: f32[8,128], index: 9, kind: output, shape index: {}]  }
   0x1   :  { %v33_v0 = vld [vmem:[%s842_s0] sm:$0xff]  ;;  %v35_v2 = vld [vmem:[%s843_s1 + $0x8] sm:$0xff]  ;;  %v36_v3 = vld [vmem:[%s843_s1 + $0x10] sm:$0xff]  ;;  %631 = vset.pattern.permute.xlu0 %v681_v5  ;;  %632 = vset.pattern.permute.xlu1 %v681_v5 }
   0x2   :  { %v34_v1 = vld [vmem:[%s843_s1] sm:$0xff]  ;;  %557 = vmatprep.subr.mxu0 %v33_v0  ;;  %v40_v6 = vld [vmem:[%s847_s5 + $0x10] sm:$0xff]  ;;  %v37_v7 = vld [vmem:[%s843_s1 + $0x18] sm:$0xff] }
   0x3   :  { %559 = vmatprep.mubr.msk.f32.mxu0 %vm62_vm0, %v34_v1  ;;  %v38_v4 = vld [vmem:[%s847_s5] sm:$0xff]  ;;  %558 = vmatpush3.msra.mxu0 %v33_v0  ;;  %v39_v8 = vld [vmem:[%s847_s5 + $0x8] sm:$0xff]  ;;  %v41_v9 = vld [vmem:[%s847_s5 + $0x18] sm:$0xff] }
   0x4   :  { %560 = vmatmul.mubr.msk.f32.vlgmr.msra.gmra.mrb[0].mxu0 %vm62_vm0, %v35_v2  ;;  %44 = vperm.xlu0 %631, %v38_v4  }
   0x5   :  { %562 = vmatprep.mubr.msk.f32.mxu0 %vm62_vm0, %v36_v3  ;;  %54 = vperm.xlu1 %632, %v40_v6  }
   0x6   :  { %14 = vsyncpa [#allocation3], 0  ;;  %v168_v10 = vld [vmem:[%s848_s6] sm:$0xff]  ;;  %v169_v11 = vld [vmem:[%s848_s6 + $0x8] sm:$0xff]  ;;  %vm192_vm1 = vcmask 261120   ;;  %v682_v63 = vmov 0.0|0.0  }
   0x7   :  { %v170_v12 = vld [vmem:[%s848_s6 + $0x10] sm:$0xff]  ;;  %v171_v13 = vld [vmem:[%s848_s6 + $0x18] sm:$0xff]  ;;  %v298_v14 = vld [vmem:[%s849_s7] sm:$0xff]  ;;  %vm683_vm2 = vmmov 0   ;;  %v684_v0 = vmov 0.0   ;;  %s685_s10 = smov [#allocation2]  }
   0x8   :  { %563 = vmatmul.mubr.msk.f32.gmra.mrb[2].mxu0 %vm62_vm0, %v37_v7  ;;  %49 = vperm.xlu0 %631, %v39_v8   ;;  %v299_v15 = vld [vmem:[%s849_s7 + $0x8] sm:$0xff]  ;;  %v300_v16 = vld [vmem:[%s849_s7 + $0x10] sm:$0xff]  ;;  %v301_v17 = vld [vmem:[%s849_s7 + $0x18] sm:$0xff]  ;;  %s510_s11 = sshll.u32 %s685_s10, 4  ;;  %s511_s11 = int_to_ptr.vmem [resolvable:$true] %s510_s11 }
   0x9   :  { %59 = vperm.xlu1 %632, %v41_v9   ;;  %v424_v18 = vld [vmem:[%s850_s8] sm:$0xff]  ;;  %v165_v38 = vld [vmem:[%s844_s2 + $0x8] sm:$0xff]  ;;  %v166_v39 = vld [vmem:[%s844_s2 + $0x10] sm:$0xff]  ;;  %s657_s12 = scalar_lea.vmem %s511_s11, 128  ;;  %p662_p1 = scmp.lt.s32.totalorder %s511_s11, %s511_s11 }
   0xa   :  { %v164_v19 = vld [vmem:[%s844_s2] sm:$0xff]  ;;  %v167_v40 = vld [vmem:[%s844_s2 + $0x18] sm:$0xff]  ;;  %v295_v60 = vld [vmem:[%s845_s3 + $0x8] sm:$0xff]  ;;  %p658_p0 = scmp.ne.s32.totalorder %s511_s11, %s657_s12  ;;  %p663_p2 = scmp.lt.s32.totalorder %s657_s12, %s657_s12 }
   0xb   :  { %573 = vmatprep.mubr.msk.f32.mxu1 %vm192_vm1, %v164_v19  ;;  %v294_v41 = vld [vmem:[%s845_s3] sm:$0xff]  ;;  %v296_v61 = vld [vmem:[%s845_s3 + $0x10] sm:$0xff]  ;;  %v297_v62 = vld [vmem:[%s845_s3 + $0x18] sm:$0xff] }
   0xc   :  { %174 = vperm.xlu0 %631, %v168_v10   ;;  %587 = vmatprep.mubr.msk.f32.mxu0 %vm192_vm1, %v294_v41  ;;  %v423_v19 = vld [vmem:[%s846_s4] sm:$0xff]  ;;  %p664_p3 = por %p663_p2, %p662_p1 }
   0xd   :  { %179 = vperm.xlu1 %632, %v169_v11  }
   0xe   :  { %p665_p4 = pnand %p664_p3, %p658_p0 }
  0x10   :  { %184 = vperm.xlu0 %631, %v170_v12  }
  0x11   :  { %189 = vperm.xlu1 %632, %v171_v13  }
  0x14   :  { %304 = vperm.xlu0 %631, %v298_v14  }
  0x15   :  { %309 = vperm.xlu1 %632, %v299_v15  }
  0x18   :  { %314 = vperm.xlu0 %631, %v300_v16  }
  0x19   :  { %319 = vperm.xlu1 %632, %v301_v17  }
  0x1c   :  { %427 = vperm.xlu0 %631, %v424_v18  }
  0x83   :  { %v45_v20 = vpop.permute.xlu0 %44 }
  0x84   :  { %v55_v21 = vpop.permute.xlu1 %54 }
  0x87   :  { %v50_v22 = vpop.permute.xlu0 %49 }
  0x88   :  { %v60_v27 = vpop.permute.xlu1 %59 }
  0x8b   :  { %v175_v43 = vpop.permute.xlu0 %174 }
  0x8c   :  { %v180_v42 = vpop.permute.xlu1 %179 }
  0x8f   :  { %v185_v50 = vpop.permute.xlu0 %184 }
  0x90   :  { %v190_v48 = vpop.permute.xlu1 %189 }
  0x93   :  { %v305_v2 = vpop.permute.xlu0 %304 }
  0x94   :  { %v310_v1 = vpop.permute.xlu1 %309 }
  0x97   :  { %v315_v9 = vpop.permute.xlu0 %314 }
  0x98   :  { %v320_v7 = vpop.permute.xlu1 %319 }
  0xd7   :  { %v561_v23 = vpop.f32.mrb[0].mxu0 }
  0xd8   :  { %v147_v24 = vadd.f32 %v561_v23, %v50_v22  ;;  %v141_v25 = vpop.f32.mrb[1].mxu0 }
  0xd9   :  { %v142_v26 = vadd.f32 %v141_v25, %v45_v20  ;;  %v428_v20 = vpop.permute.xlu0 %427 }
  0xda   :  { %633 = vtanh.f32 %v147_v24 }
  0xdb   :  { %635 = vtanh.f32 %v142_v26  ;;  %v564_v28 = vpop.f32.mrb[2].mxu0 }
  0xdc   :  { %v157_v29 = vadd.f32 %v564_v28, %v60_v27  ;;  %v151_v30 = vpop.f32.mrb[3].mxu0 }
  0xdd   :  { %v152_v31 = vadd.f32 %v151_v30, %v55_v21 }
  0xde   :  { %637 = vtanh.f32 %v157_v29 }
  0xdf   :  { %639 = vtanh.f32 %v152_v31 }
  0xe4   :  { %v634_v32 = vpop.eup %633 }
  0xe5   :  { %v636_v33 = vpop.eup %635 }
  0xe6   :  { %v604_v34 = vpack.c.bf16 %v634_v32, %v636_v33 }
  0xe8   :  { %v638_v35 = vpop.eup %637  ;;  %605 = vmatprep.subr.bf16.mxu1 %v604_v34 }
  0xe9   :  { %v640_v36 = vpop.eup %639  ;;  %607 = vmatpush3.bf16.msra.mxu1 %v604_v34 }
  0xea   :  { %v608_v37 = vpack.c.bf16 %v638_v35, %v640_v36 }
  0xec   :  { %609 = vmatprep.subr.bf16.mxu1 %v608_v37 }
  0xed   :  { %611 = vmatpush3.bf16.msra.mxu1 %v608_v37 }
  0xee   :  { %620 = vmatprep.subr.bf16.mxu1 %v682_v63 }
  0xf0   :  { %574 = vmatmul.mubr.msk.f32.vlgmr.msra.gmra.mrb[0].mxu1 %vm192_vm1, %v165_v38 }
  0xf1   :  { %576 = vmatprep.mubr.msk.f32.mxu1 %vm192_vm1, %v166_v39 }
  0xf4   :  { %577 = vmatmul.mubr.msk.f32.gmra.mrb[2].mxu1 %vm192_vm1, %v167_v40 }
  0xf5   :  { %601 = vmatprep.mubr.msk.f32.mxu1 %vm683_vm2, %v684_v0 }
 0x1c3   :  { %v575_v44 = vpop.f32.mrb[0].mxu1 }
 0x1c4   :  { %v277_v45 = vadd.f32 %v575_v44, %v180_v42  ;;  %v271_v46 = vpop.f32.mrb[1].mxu1 }
 0x1c5   :  { %v272_v47 = vadd.f32 %v271_v46, %v175_v43 }
 0x1c6   :  { %641 = vtanh.f32 %v277_v45 }
 0x1c7   :  { %643 = vtanh.f32 %v272_v47  ;;  %v578_v49 = vpop.f32.mrb[2].mxu1 }
 0x1c8   :  { %v287_v51 = vadd.f32 %v578_v49, %v190_v48  ;;  %v281_v52 = vpop.f32.mrb[3].mxu1 }
 0x1c9   :  { %v282_v53 = vadd.f32 %v281_v52, %v185_v50 }
 0x1ca   :  { %645 = vtanh.f32 %v287_v51 }
 0x1cb   :  { %647 = vtanh.f32 %v282_v53 }
 0x1d0   :  { %v642_v54 = vpop.eup %641 }
 0x1d1   :  { %v644_v55 = vpop.eup %643 }
 0x1d2   :  { %v612_v56 = vpack.c.bf16 %v642_v54, %v644_v55 }
 0x1d4   :  { %v646_v57 = vpop.eup %645  ;;  %613 = vmatprep.subr.bf16.mxu0 %v612_v56 }
 0x1d5   :  { %v648_v58 = vpop.eup %647  ;;  %615 = vmatpush3.bf16.msra.mxu0 %v612_v56 }
 0x1d6   :  { %v616_v59 = vpack.c.bf16 %v646_v57, %v648_v58 }
 0x1d8   :  { %617 = vmatprep.subr.bf16.mxu0 %v616_v59 }
 0x1d9   :  { %619 = vmatpush3.bf16.msra.mxu0 %v616_v59 }
 0x1dc   :  { %588 = vmatmul.mubr.msk.f32.vlgmr.msra.gmra.mrb[4].mxu0 %vm192_vm1, %v295_v60 }
 0x1dd   :  { %590 = vmatprep.mubr.msk.f32.mxu0 %vm192_vm1, %v296_v61 }
 0x1e0   :  { %591 = vmatmul.mubr.msk.f32.gmra.mrb[6].mxu0 %vm192_vm1, %v297_v62 }
 0x2af   :  { %v589_v3 = vpop.f32.mrb[4].mxu0 }
 0x2b0   :  { %v406_v4 = vadd.f32 %v589_v3, %v310_v1  ;;  %v400_v5 = vpop.f32.mrb[5].mxu0 }
 0x2b1   :  { %v401_v6 = vadd.f32 %v400_v5, %v305_v2 }
 0x2b2   :  { %649 = vtanh.f32 %v406_v4 }
 0x2b3   :  { %651 = vtanh.f32 %v401_v6  ;;  %v592_v8 = vpop.f32.mrb[6].mxu0 }
 0x2b4   :  { %v416_v10 = vadd.f32 %v592_v8, %v320_v7  ;;  %v410_v11 = vpop.f32.mrb[7].mxu0 }
 0x2b5   :  { %v411_v12 = vadd.f32 %v410_v11, %v315_v9 }
 0x2b6   :  { %653 = vtanh.f32 %v416_v10 }
 0x2b7   :  { %655 = vtanh.f32 %v411_v12 }
 0x2bc   :  { %v650_v13 = vpop.eup %649 }
 0x2bd   :  { %v652_v14 = vpop.eup %651 }
 0x2be   :  { %v621_v15 = vpack.c.bf16 %v650_v13, %v652_v14 }
 0x2c0   :  { %v654_v16 = vpop.eup %653  ;;  %622 = vmatpush3.bf16.msra.mxu1 %v621_v15 }
 0x2c1   :  { %v656_v17 = vpop.eup %655  ;;  %623 = vmatprep.subr.bf16.mxu1 %v682_v63 }
 0x2c2   :  { %v624_v18 = vpack.c.bf16 %v654_v16, %v656_v17 }
 0x2c4   :  { %625 = vmatpush3.bf16.msra.mxu1 %v624_v18 }
 0x2c7   :  { %602 = vmatmul.mubr.msk.f32.vlgmr.msra.gmra.mrb[4].mxu1 %vm192_vm1, %v423_v19 }
 0x39a   :  { %v499_v21 = vpop.f32.mrb[4].mxu1 }
 0x39b   :  { %v500_v22 = vadd.f32 %v499_v21, %v428_v20  ;;  %v603_v23 = vpop.f32.mrb[5].mxu1 }
 0x39d   :  { %503 = vst [vmem:[#allocation2] sm:$0xff] %v500_v22 }
 0x39e   :  { %668 = shalt.err (!%p665_p4)
}
 0x39f   :  { %s669_s4 = scalar_lea.hbm %s851_s9, 128 }
 0x3a0   :  { %p670_p5 = scmp.ne.s32.totalorder %s851_s9, %s669_s4  ;;  %p673_p6 = scmp.lt.u32.totalorder %s669_s4, %s851_s9 }
 0x3a2   :  { %p675_p7 = pnand %p673_p6, %p670_p5 }
 0x3a4   :  { %678 = shalt.err (!%p675_p7)
}
 0x3a5   :  { %513 = dma.vmem_to_hbm [thread:$0]  %s511_s11, 128, %s851_s9, [#allocation3]  }
 0x3a6   :  { %679 = dma.done.wait [#allocation3], 128  }
 0x3a7   :  { %680 = vsyncadd [#allocation3], 4294967168 }
 0x3a8   :  { %517 = vsyncpa [#allocation3], 1 }

</bundles_post_ra>
